<compile_context>
chip_gen: v7x
topology: tpu7x:2x2x1
jax: 0.10.0
libtpu: 0.0.40
codegen_flags: <defaults>
</compile_context>

<pallas_src>
import functools

import jax
import jax.numpy as jnp
from jax.experimental import pallas as pl
from jax.experimental.pallas import tpu as pltpu

_LANE = 128


def _round_up(n, m):
    return ((n + m - 1) // m) * m


def _tpu_generation():
    """Best-effort TPU generation (5, 6, 7, ...); defaults to 6 if unknown."""
    try:
        kind = jax.devices()[0].device_kind.lower()
    except Exception:
        return 6
    for g in (7, 6, 5, 4):
        if f"v{g}" in kind:
            return g
    return 6


def gcn_simple_kernel(x_ref, w1_ref, b1_ref, w2_ref, b2_ref, w3_ref, b3_ref,
                      wl_ref, bl_ref, o_ref, *, num_nodes, act_dtype):
    """One block of G graphs; the (tiny) weights stay resident across the grid."""
    V = num_nodes
    rows = x_ref.shape[0]          # G * V node rows
    G = o_ref.shape[0]

    # Graph 0 (the only graph with real edges) occupies the first V rows of grid
    # block 0; everywhere else the normalized adjacency is identity.
    local_row = jax.lax.broadcasted_iota(jnp.int32, (rows, 1), 0)
    is_g0 = jnp.logical_and(pl.program_id(0) == 0, local_row < V)   # (rows, 1)
    inv_v = jnp.float32(1.0 / V)

    def gcn_layer(h, w_ref, b_ref):
        # Linear part of GCNConv on the MXU (bf16 in, f32 accumulation).
        lin = jnp.dot(h, w_ref[...], preferred_element_type=jnp.float32)
        # A_hat @ lin: graph-0 rows -> mean over the first V rows, others identity.
        # Static V-row slice keeps the cross-sublane reduce at (V, H), not (rows, H).
        g0_mean = jnp.sum(lin[:V], axis=0, keepdims=True) * inv_v
        sel = jnp.where(is_g0, g0_mean.astype(act_dtype), lin.astype(act_dtype))
        return sel + b_ref[...]                    # act_dtype (f32 on v5e, bf16 else)

    x = x_ref[...]                                 # (rows, L) bf16, un-padded K
    h = gcn_layer(x, w1_ref, b1_ref)               # conv1
    h = jnp.maximum(h, 0).astype(jnp.bfloat16)     # relu -> MXU input dtype
    h = gcn_layer(h, w2_ref, b2_ref)               # conv2
    h = jnp.maximum(h, 0)                          # relu

    # global_mean_pool, folded in front of conv3 (A_hat row-stochastic per graph,
    # mean-pool linear -> pooling commutes with conv3 exactly).
    pooled = jnp.mean(h.astype(jnp.float32).reshape(G, V, h.shape[-1]), axis=1)

    # conv3 + (dropout = eval identity) + Linear head on the tiny (G, H) matrix.
    z = jnp.dot(pooled.astype(jnp.bfloat16), w3_ref[...],
                preferred_element_type=jnp.float32) + b3_ref[...]
    out = jnp.dot(z.astype(jnp.bfloat16), wl_ref[...],
                  preferred_element_type=jnp.float32) + bl_ref[...]
    o_ref[...] = out.astype(o_ref.dtype)


def _pick_block_graphs(B, V, L, Hp, Op, budget_bytes, prefer_steps):
    """Largest legal graphs-per-block G under the VMEM budget.

    Legality: G divides B and either G == B (full-dim block) or G % 8 == 0 with
    G*V a multiple of 16 (bf16 sublane packing of the x block).  On 2-TensorCore
    chips we additionally prefer a G that yields >= prefer_steps grid steps.
    """
    def legal(g):
        if B % g:
            return False
        if g == B:
            return True
        return g % 8 == 0 and (g * V) % 16 == 0

    def vmem(g):
        rows = g * V
        return (2 * rows * L * 2                 # x block, bf16, double-buffered
                + 2 * g * Op * 4                 # out block, f32, double-buffered
                + rows * Hp * (4 + 4 + 2 + 4))   # live lin/act/bf16-copy/pool intermediates

    target_rows = 2048                           # amortizes ~0.35us/step, near-roofline DMA
    cands = [g for g in range(1, B + 1) if legal(g) and vmem(g) <= budget_bytes]
    if not cands:                                # fall back to the smallest legal block
        cands = [min((g for g in range(1, B + 1) if legal(g)), key=vmem)]
    preferred = [g for g in cands if B // g >= prefer_steps]
    pool = preferred if preferred else cands
    small = [g for g in pool if g * V <= target_rows]
    return max(small) if small else min(pool)


@functools.partial(jax.jit, static_argnames=("num_nodes",))
def gcn_simple_forward(x_bvl, params, num_nodes):
    """x_bvl: (B, V, L) float32.  Returns (B, output_dim) float32."""
    B, V, L = x_bvl.shape
    assert V == num_nodes
    w1, b1, w2, b2, w3, b3, wl, bl = params
    H = w1.shape[0]
    O = wl.shape[0]

    Hp = _round_up(H, _LANE)
    Op = _round_up(O, _LANE)

    gen = _tpu_generation()
    # v5e has no bf16 VPU -> keep bias/ReLU/select in f32 there; bf16 on v6e/v7x.
    act_dtype = jnp.bfloat16 if gen >= 6 else jnp.float32
    if gen >= 7:                               # v7x: 64 MiB VMEM, 2 TensorCores/chip
        vmem_limit = 40 * 1024 * 1024
        prefer_steps = 2
    else:                                      # v5e/v6e: 128 MiB VMEM, 1 TensorCore
        vmem_limit = 96 * 1024 * 1024
        prefer_steps = 1

    # Pre-transpose to (in, out); zero-pad only the OUTPUT dim to lane-dense 128.
    def prep_w(w, in_dim, out_p):                   # w: (out, in) float32
        wt = jnp.zeros((in_dim, out_p), jnp.float32)
        wt = wt.at[:w.shape[1], :w.shape[0]].set(w.T.astype(jnp.float32))
        return wt.astype(jnp.bfloat16)

    def prep_b(b, out_p, dtype):                    # b: (1, out) float32
        bp = jnp.zeros((1, out_p), jnp.float32).at[:, :b.shape[1]].set(
            b.astype(jnp.float32))
        return bp.astype(dtype)

    w1t = prep_w(w1, L, Hp)                         # (L, Hp): K stays un-padded
    w2t = prep_w(w2, Hp, Hp)
    w3t = prep_w(w3, Hp, Hp)
    wlt = prep_w(wl, Hp, Op)
    b1p = prep_b(b1, Hp, act_dtype)
    b2p = prep_b(b2, Hp, act_dtype)
    b3p = prep_b(b3, Hp, jnp.float32)
    blp = prep_b(bl, Op, jnp.float32)

    # Flatten nodes; NO lane padding of the feature dim in HBM (8x less x traffic
    # at L=16): the first matmul contracts over K=L directly.
    x_flat = x_bvl.reshape(B * V, L).astype(jnp.bfloat16)

    # Resident weights/biases (double-buffered copies included) + fixed headroom.
    weight_bytes = 2 * ((L * Hp + 2 * Hp * Hp + Hp * Op) * 2 + (3 * Hp + Op) * 4)
    budget = vmem_limit - weight_bytes - 4 * 1024 * 1024
    G = _pick_block_graphs(B, V, L, Hp, Op, budget, prefer_steps)
    rows = G * V
    grid = (B // G,)

    block_x = lambda i: (i, 0)
    resident = lambda i: (0, 0)       # same block every step -> stays in VMEM

    kernel = functools.partial(gcn_simple_kernel, num_nodes=V, act_dtype=act_dtype)

    out_pad = pl.pallas_call(
        kernel,
        out_shape=jax.ShapeDtypeStruct((B, Op), jnp.float32),
        grid=grid,
        in_specs=[
            pl.BlockSpec((rows, L), block_x),       # x block (pipelined)
            pl.BlockSpec((L, Hp), resident),        # W1^T
            pl.BlockSpec((1, Hp), resident),        # b1
            pl.BlockSpec((Hp, Hp), resident),       # W2^T
            pl.BlockSpec((1, Hp), resident),        # b2
            pl.BlockSpec((Hp, Hp), resident),       # W3^T
            pl.BlockSpec((1, Hp), resident),        # b3
            pl.BlockSpec((Hp, Op), resident),       # Wl^T
            pl.BlockSpec((1, Op), resident),        # bl
        ],
        out_specs=pl.BlockSpec((G, Op), block_x),
        compiler_params=pltpu.CompilerParams(
            dimension_semantics=("parallel",),
            vmem_limit_bytes=vmem_limit,
        ),
    )(x_flat, w1t, b1p, w2t, b2p, w3t, b3p, wlt, blp)

    return out_pad[:, :O]


def _reference_forward(x_bvl, params, num_nodes):
    """Pure-JAX f32 mirror of the PyTorch forward (eval mode), for verification."""
    B, V, L = x_bvl.shape
    w1, b1, w2, b2, w3, b3, wl, bl = params
    h = x_bvl.reshape(-1, L).astype(jnp.float32)

    def gcnconv(h, W, b):
        lin = h @ W.T
        g0_mean = jnp.mean(lin[:V], axis=0, keepdims=True)
        lin = lin.at[:V].set(jnp.broadcast_to(g0_mean, (V, lin.shape[1])))
        return lin + b

    h = jax.nn.relu(gcnconv(h, w1, b1))
    h = jax.nn.relu(gcnconv(h, w2, b2))
    h = gcnconv(h, w3, b3)
    pooled = h.reshape(B, V, -1).mean(axis=1)
    return pooled @ wl.T + bl


def init_params(key, series_len, hidden, out_dim):
    """Deterministic synthetic parameters with the module's shapes."""
    ks = jax.random.split(key, 8)

    def lin_init(k, out_f, in_f):
        scale = 1.0 / jnp.sqrt(jnp.float32(in_f))
        return jax.random.uniform(k, (out_f, in_f), jnp.float32, -scale, scale)

    w1 = lin_init(ks[0], hidden, series_len)            # conv1.lin.weight
    b1 = jnp.zeros((1, hidden), jnp.float32) + 0.01     # conv1.bias
    w2 = lin_init(ks[1], hidden, hidden)                # conv2.lin.weight
    b2 = jnp.zeros((1, hidden), jnp.float32) - 0.02     # conv2.bias
    w3 = lin_init(ks[2], hidden, hidden)                # conv3.lin.weight
    b3 = jnp.zeros((1, hidden), jnp.float32) + 0.03     # conv3.bias
    wl = lin_init(ks[3], out_dim, hidden)               # lin.weight
    bl = jax.random.uniform(ks[4], (1, out_dim), jnp.float32, -0.1, 0.1)  # lin.bias
    return (w1, b1, w2, b2, w3, b3, wl, bl)


if __name__ == "__main__":
    # GCN_simple(input_series_length=16, input_series_dim=8,
    #            hidden_channels=32, output_dimension=8), batch_size=2
    B, V, L, H, O = 2, 8, 16, 32, 8

    key = jax.random.PRNGKey(0)
    kx, kp = jax.random.split(key)
    x = jax.random.normal(kx, (B, V, L), dtype=jnp.float32)
    params = init_params(kp, L, H, O)

    out = gcn_simple_forward(x, params, num_nodes=V)
    out = jax.block_until_ready(out)

    ref = _reference_forward(x, params, num_nodes=V)
    assert out.shape == (B, O)
    # bf16 MXU inputs / bf16 activation path vs the f32 reference.
    assert jnp.allclose(out, ref, atol=5e-2, rtol=5e-2), "mismatch vs reference"

    print("KERNEL_OK")
</pallas_src>

<mosaic_0001>
module attributes {stable_mosaic.version = 11 : i64} {
  func.func @gcn_simple_kernel(%arg0: i32, %arg1: memref<16x16xbf16, #tpu.memory_space<vmem>>, %arg2: memref<16x128xbf16, #tpu.memory_space<vmem>>, %arg3: memref<1x128xbf16, #tpu.memory_space<vmem>>, %arg4: memref<128x128xbf16, #tpu.memory_space<vmem>>, %arg5: memref<1x128xbf16, #tpu.memory_space<vmem>>, %arg6: memref<128x128xbf16, #tpu.memory_space<vmem>>, %arg7: memref<1x128xf32, #tpu.memory_space<vmem>>, %arg8: memref<128x128xbf16, #tpu.memory_space<vmem>>, %arg9: memref<1x128xf32, #tpu.memory_space<vmem>>, %arg10: memref<2x128xf32, #tpu.memory_space<vmem>>) attributes {dimension_semantics = [#tpu.dimension_semantics<parallel>], iteration_bounds = array<i64: 1>, scalar_prefetch = 0 : i64, scratch_operands = 0 : i64, tpu.core_type = #tpu.core_type<tc>, window_params = [{transform_indices = @transform_0, window_bounds = array<i64: 16, 16>}, {pipeline_mode = #tpu.pipeline_mode<synchronous>, transform_indices = @transform_1, window_bounds = array<i64: 16, 128>}, {pipeline_mode = #tpu.pipeline_mode<synchronous>, transform_indices = @transform_2, window_bounds = array<i64: 1, 128>}, {pipeline_mode = #tpu.pipeline_mode<synchronous>, transform_indices = @transform_3, window_bounds = array<i64: 128, 128>}, {pipeline_mode = #tpu.pipeline_mode<synchronous>, transform_indices = @transform_4, window_bounds = array<i64: 1, 128>}, {pipeline_mode = #tpu.pipeline_mode<synchronous>, transform_indices = @transform_5, window_bounds = array<i64: 128, 128>}, {pipeline_mode = #tpu.pipeline_mode<synchronous>, transform_indices = @transform_6, window_bounds = array<i64: 1, 128>}, {pipeline_mode = #tpu.pipeline_mode<synchronous>, transform_indices = @transform_7, window_bounds = array<i64: 128, 128>}, {pipeline_mode = #tpu.pipeline_mode<synchronous>, transform_indices = @transform_8, window_bounds = array<i64: 1, 128>}, {transform_indices = @transform_9, window_bounds = array<i64: 2, 128>}]} {
    %0 = tpu.iota {dimensions = array<i32: 0>} : vector<16x1xi32>
    %c0_i32 = arith.constant 0 : i32
    %1 = arith.cmpi eq, %arg0, %c0_i32 : i32
    %c8_i32 = arith.constant 8 : i32
    %2 = vector.broadcast %c8_i32 : i32 to vector<16x1xi32>
    %3 = arith.cmpi slt, %0, %2 : vector<16x1xi32>
    %4 = vector.broadcast %1 : i1 to vector<16x1xi1>
    %5 = arith.andi %4, %3 : vector<16x1xi1>
    %c0 = arith.constant 0 : index
    %c0_0 = arith.constant 0 : index
    %6 = vector.load %arg1[%c0, %c0_0] : memref<16x16xbf16, #tpu.memory_space<vmem>>, vector<16x16xbf16>
    %c0_1 = arith.constant 0 : index
    %c0_2 = arith.constant 0 : index
    %7 = vector.load %arg2[%c0_1, %c0_2] : memref<16x128xbf16, #tpu.memory_space<vmem>>, vector<16x128xbf16>
    %cst = arith.constant dense<0.000000e+00> : vector<16x128xf32>
    %8 = tpu.matmul %6, %7, %cst {dimension_numbers = #tpu.dot_dimension_numbers<[1], [0], [0], [1], [0, 0, 1, 1], [], []>} : vector<16x16xbf16>, vector<16x128xbf16>, vector<16x128xf32> -> vector<16x128xf32>
    %9 = vector.extract_strided_slice %8 {offsets = [0, 0], sizes = [8, 128], strides = [1, 1]} : vector<16x128xf32> to vector<8x128xf32>
    %cst_3 = arith.constant dense<0.000000e+00> : vector<128xf32>
    %10 = vector.multi_reduction <add>, %9, %cst_3 [0] : vector<8x128xf32> to vector<128xf32>
    %11 = vector.shape_cast %10 : vector<128xf32> to vector<1x128xf32>
    %cst_4 = arith.constant 1.250000e-01 : f32
    %12 = vector.broadcast %cst_4 : f32 to vector<1x128xf32>
    %13 = arith.mulf %11, %12 : vector<1x128xf32>
    %14 = arith.truncf %13 : vector<1x128xf32> to vector<1x128xbf16>
    %15 = arith.truncf %8 : vector<16x128xf32> to vector<16x128xbf16>
    %16 = vector.shape_cast %5 : vector<16x1xi1> to vector<16x1xi1>
    %17 = vector.broadcast %16 : vector<16x1xi1> to vector<16x128xi1>
    %18 = vector.shape_cast %14 : vector<1x128xbf16> to vector<1x128xbf16>
    %19 = vector.broadcast %18 : vector<1x128xbf16> to vector<16x128xbf16>
    %20 = arith.select %17, %19, %15 : vector<16x128xi1>, vector<16x128xbf16>
    %c0_5 = arith.constant 0 : index
    %c0_6 = arith.constant 0 : index
    %21 = vector.load %arg3[%c0_5, %c0_6] : memref<1x128xbf16, #tpu.memory_space<vmem>>, vector<1x128xbf16>
    %22 = vector.broadcast %21 : vector<1x128xbf16> to vector<16x128xbf16>
    %23 = arith.addf %20, %22 : vector<16x128xbf16>
    %cst_7 = arith.constant 0.000000e+00 : bf16
    %24 = vector.broadcast %cst_7 : bf16 to vector<16x128xbf16>
    %25 = arith.maximumf %23, %24 : vector<16x128xbf16>
    %c0_8 = arith.constant 0 : index
    %c0_9 = arith.constant 0 : index
    %26 = vector.load %arg4[%c0_8, %c0_9] : memref<128x128xbf16, #tpu.memory_space<vmem>>, vector<128x128xbf16>
    %cst_10 = arith.constant dense<0.000000e+00> : vector<16x128xf32>
    %27 = tpu.matmul %25, %26, %cst_10 {dimension_numbers = #tpu.dot_dimension_numbers<[1], [0], [0], [1], [0, 0, 1, 1], [], []>} : vector<16x128xbf16>, vector<128x128xbf16>, vector<16x128xf32> -> vector<16x128xf32>
    %28 = vector.extract_strided_slice %27 {offsets = [0, 0], sizes = [8, 128], strides = [1, 1]} : vector<16x128xf32> to vector<8x128xf32>
    %cst_11 = arith.constant dense<0.000000e+00> : vector<128xf32>
    %29 = vector.multi_reduction <add>, %28, %cst_11 [0] : vector<8x128xf32> to vector<128xf32>
    %30 = vector.shape_cast %29 : vector<128xf32> to vector<1x128xf32>
    %cst_12 = arith.constant 1.250000e-01 : f32
    %31 = vector.broadcast %cst_12 : f32 to vector<1x128xf32>
    %32 = arith.mulf %30, %31 : vector<1x128xf32>
    %33 = arith.truncf %32 : vector<1x128xf32> to vector<1x128xbf16>
    %34 = arith.truncf %27 : vector<16x128xf32> to vector<16x128xbf16>
    %35 = vector.shape_cast %5 : vector<16x1xi1> to vector<16x1xi1>
    %36 = vector.broadcast %35 : vector<16x1xi1> to vector<16x128xi1>
    %37 = vector.shape_cast %33 : vector<1x128xbf16> to vector<1x128xbf16>
    %38 = vector.broadcast %37 : vector<1x128xbf16> to vector<16x128xbf16>
    %39 = arith.select %36, %38, %34 : vector<16x128xi1>, vector<16x128xbf16>
    %c0_13 = arith.constant 0 : index
    %c0_14 = arith.constant 0 : index
    %40 = vector.load %arg5[%c0_13, %c0_14] : memref<1x128xbf16, #tpu.memory_space<vmem>>, vector<1x128xbf16>
    %41 = vector.broadcast %40 : vector<1x128xbf16> to vector<16x128xbf16>
    %42 = arith.addf %39, %41 : vector<16x128xbf16>
    %cst_15 = arith.constant 0.000000e+00 : bf16
    %43 = vector.broadcast %cst_15 : bf16 to vector<16x128xbf16>
    %44 = arith.maximumf %42, %43 : vector<16x128xbf16>
    %45 = arith.extf %44 : vector<16x128xbf16> to vector<16x128xf32>
    %46 = vector.shape_cast %45 : vector<16x128xf32> to vector<2x8x128xf32>
    %cst_16 = arith.constant dense<0.000000e+00> : vector<2x128xf32>
    %47 = vector.multi_reduction <add>, %46, %cst_16 [1] : vector<2x8x128xf32> to vector<2x128xf32>
    %cst_17 = arith.constant 8.000000e+00 : f32
    %48 = vector.broadcast %cst_17 : f32 to vector<2x128xf32>
    %49 = arith.divf %47, %48 : vector<2x128xf32>
    %50 = arith.truncf %49 : vector<2x128xf32> to vector<2x128xbf16>
    %c0_18 = arith.constant 0 : index
    %c0_19 = arith.constant 0 : index
    %51 = vector.load %arg6[%c0_18, %c0_19] : memref<128x128xbf16, #tpu.memory_space<vmem>>, vector<128x128xbf16>
    %cst_20 = arith.constant dense<0.000000e+00> : vector<2x128xf32>
    %52 = tpu.matmul %50, %51, %cst_20 {dimension_numbers = #tpu.dot_dimension_numbers<[1], [0], [0], [1], [0, 0, 1, 1], [], []>} : vector<2x128xbf16>, vector<128x128xbf16>, vector<2x128xf32> -> vector<2x128xf32>
    %c0_21 = arith.constant 0 : index
    %c0_22 = arith.constant 0 : index
    %53 = vector.load %arg7[%c0_21, %c0_22] : memref<1x128xf32, #tpu.memory_space<vmem>>, vector<1x128xf32>
    %54 = vector.broadcast %53 : vector<1x128xf32> to vector<2x128xf32>
    %55 = arith.addf %52, %54 : vector<2x128xf32>
    %56 = arith.truncf %55 : vector<2x128xf32> to vector<2x128xbf16>
    %c0_23 = arith.constant 0 : index
    %c0_24 = arith.constant 0 : index
    %57 = vector.load %arg8[%c0_23, %c0_24] : memref<128x128xbf16, #tpu.memory_space<vmem>>, vector<128x128xbf16>
    %cst_25 = arith.constant dense<0.000000e+00> : vector<2x128xf32>
    %58 = tpu.matmul %56, %57, %cst_25 {dimension_numbers = #tpu.dot_dimension_numbers<[1], [0], [0], [1], [0, 0, 1, 1], [], []>} : vector<2x128xbf16>, vector<128x128xbf16>, vector<2x128xf32> -> vector<2x128xf32>
    %c0_26 = arith.constant 0 : index
    %c0_27 = arith.constant 0 : index
    %59 = vector.load %arg9[%c0_26, %c0_27] : memref<1x128xf32, #tpu.memory_space<vmem>>, vector<1x128xf32>
    %60 = vector.broadcast %59 : vector<1x128xf32> to vector<2x128xf32>
    %61 = arith.addf %58, %60 : vector<2x128xf32>
    %c0_28 = arith.constant 0 : index
    %c0_29 = arith.constant 0 : index
    %62 = vector.load %arg10[%c0_28, %c0_29] : memref<2x128xf32, #tpu.memory_space<vmem>>, vector<2x128xf32>
    tpu.vector_store %arg10[%c0_28, %c0_29], %61 {strides = array<i32>} : memref<2x128xf32, #tpu.memory_space<vmem>>, vector<2x128xf32>,
    return
  }
  func.func @transform_0(%arg0: i32) -> (i32, i32) {
    %c0_i32 = arith.constant 0 : i32
    %c0_i32_0 = arith.constant 0 : i32
    return %arg0, %c0_i32 : i32, i32
  }
  func.func @transform_1(%arg0: i32) -> (i32, i32) {
    %c0_i32 = arith.constant 0 : i32
    %c0_i32_0 = arith.constant 0 : i32
    %c0_i32_1 = arith.constant 0 : i32
    return %c0_i32, %c0_i32_0 : i32, i32
  }
  func.func @transform_2(%arg0: i32) -> (i32, i32) {
    %c0_i32 = arith.constant 0 : i32
    %c0_i32_0 = arith.constant 0 : i32
    %c0_i32_1 = arith.constant 0 : i32
    return %c0_i32, %c0_i32_0 : i32, i32
  }
  func.func @transform_3(%arg0: i32) -> (i32, i32) {
    %c0_i32 = arith.constant 0 : i32
    %c0_i32_0 = arith.constant 0 : i32
    %c0_i32_1 = arith.constant 0 : i32
    return %c0_i32, %c0_i32_0 : i32, i32
  }
  func.func @transform_4(%arg0: i32) -> (i32, i32) {
    %c0_i32 = arith.constant 0 : i32
    %c0_i32_0 = arith.constant 0 : i32
    %c0_i32_1 = arith.constant 0 : i32
    return %c0_i32, %c0_i32_0 : i32, i32
  }
  func.func @transform_5(%arg0: i32) -> (i32, i32) {
    %c0_i32 = arith.constant 0 : i32
    %c0_i32_0 = arith.constant 0 : i32
    %c0_i32_1 = arith.constant 0 : i32
    return %c0_i32, %c0_i32_0 : i32, i32
  }
  func.func @transform_6(%arg0: i32) -> (i32, i32) {
    %c0_i32 = arith.constant 0 : i32
    %c0_i32_0 = arith.constant 0 : i32
    %c0_i32_1 = arith.constant 0 : i32
    return %c0_i32, %c0_i32_0 : i32, i32
  }
  func.func @transform_7(%arg0: i32) -> (i32, i32) {
    %c0_i32 = arith.constant 0 : i32
    %c0_i32_0 = arith.constant 0 : i32
    %c0_i32_1 = arith.constant 0 : i32
    return %c0_i32, %c0_i32_0 : i32, i32
  }
  func.func @transform_8(%arg0: i32) -> (i32, i32) {
    %c0_i32 = arith.constant 0 : i32
    %c0_i32_0 = arith.constant 0 : i32
    %c0_i32_1 = arith.constant 0 : i32
    return %c0_i32, %c0_i32_0 : i32, i32
  }
  func.func @transform_9(%arg0: i32) -> (i32, i32) {
    %c0_i32 = arith.constant 0 : i32
    %c0_i32_0 = arith.constant 0 : i32
    return %arg0, %c0_i32 : i32, i32
  }
}

</mosaic_0001>

<bundles_post_ra>
// kernel: gcn_simple_forward.1
= control target key start
LH: loop header
LB: loop body
LE: loop exit
PB: predicated region body
PF: predicated region fallthrough
CT: control target
= control target key end

     0   :  { %14 = vsyncpa [#allocation3], 0  ;;  %s1316_s0 = inlined_call_operand.hbm [shape: bf16[16,16], index: 0, kind: input, shape index: {}]   ;;  %s1317_s1 = inlined_call_operand.hbm [shape: bf16[16,128], index: 1, kind: input, shape index: {}]   ;;  %s1318_s2 = inlined_call_operand.hbm [shape: bf16[1,128], index: 2, kind: input, shape index: {}]   ;;  %s1319_s3 = inlined_call_operand.hbm [shape: bf16[128,128], index: 3, kind: input, shape index: {}]   ;;  %s1320_s4 = inlined_call_operand.hbm [shape: bf16[1,128], index: 4, kind: input, shape index: {}]   ;;  %s1321_s5 = inlined_call_operand.hbm [shape: bf16[128,128], index: 5, kind: input, shape index: {}]   ;;  %s1322_s6 = inlined_call_operand.hbm [shape: f32[1,128], index: 6, kind: input, shape index: {}]   ;;  %s1323_s7 = inlined_call_operand.hbm [shape: bf16[128,128], index: 7, kind: input, shape index: {}]   ;;  %s1324_s8 = inlined_call_operand.hbm [shape: f32[1,128], index: 8, kind: input, shape index: {}]   ;;  %s1325_s9 = inlined_call_operand.hbm [shape: f32[2,128], index: 9, kind: output, shape index: {}]  }
   0x1   :  { %15 = vsyncpa [#allocation6], 0 }
   0x2   :  { %16 = vsyncpa [#allocation9], 0 }
   0x3   :  { %17 = vsyncpa [#allocation12], 0 }
   0x4   :  { %18 = vsyncpa [#allocation15], 0 }
   0x5   :  { %19 = vsyncpa [#allocation4], 0  ;;  %s1047_s30 = smov [#allocation5]   ;;  %s1048_s11 = smov [#allocation8]  }
   0x6   :  { %s37_s10 = sshll.u32 %s1047_s30, 4  ;;  %s59_s12 = sshll.u32 %s1048_s11, 4  ;;  %s38_s10 = int_to_ptr.vmem [resolvable:$true] %s37_s10  ;;  %s1113_s12 = int_to_ptr.vmem [resolvable:$true] %s59_s12 }
   0x7   :  { %s815_s15 = scalar_lea.hbm %s1317_s1, 128 }
   0x8   :  { %p816_p0 = scmp.ne.s32.totalorder %s1317_s1, %s815_s15  ;;  %p819_p1 = scmp.lt.u32.totalorder %s815_s15, %s1317_s1 }
   0xa   :  { %p821_p2 = pnand %p819_p1, %p816_p0 }
   0xc   :  { %824 = shalt.err (!%p821_p2)
}
   0xd   :  { %s825_s20 = scalar_lea.vmem %s38_s10, 128  ;;  %p830_p4 = scmp.lt.s32.totalorder %s38_s10, %s38_s10 }
   0xe   :  { %p826_p3 = scmp.ne.s32.totalorder %s38_s10, %s825_s20  ;;  %p831_p5 = scmp.lt.s32.totalorder %s825_s20, %s825_s20 }
  0x10   :  { %p832_p6 = por %p831_p5, %p830_p4 }
  0x12   :  { %p833_p7 = pnand %p832_p6, %p826_p3 }
  0x14   :  { %836 = shalt.err (!%p833_p7)
}
  0x15   :  { %s1049_s21 = smov 64   ;;  %s1050_s22 = smov 4  }
  0x16   :  { %43 = dma.hbm_to_vmem [thread:$0]  %s1317_s1, 128, %s38_s10, [#allocation6], %s1049_s21, %s1049_s21, %s1050_s22  }
  0x17   :  { %s837_s27 = scalar_lea.hbm %s1319_s3, 1024 }
  0x18   :  { %p838_p8 = scmp.ne.s32.totalorder %s1319_s3, %s837_s27  ;;  %p841_p9 = scmp.lt.u32.totalorder %s837_s27, %s1319_s3 }
  0x1a   :  { %p843_p10 = pnand %p841_p9, %p838_p8 }
  0x1c   :  { %846 = shalt.err (!%p843_p10)
}
  0x1d   :  { %s847_s13 = scalar_lea.vmem %s1113_s12, 1024  ;;  %p852_p12 = scmp.lt.s32.totalorder %s1113_s12, %s1113_s12 }
  0x1e   :  { %p848_p11 = scmp.ne.s32.totalorder %s1113_s12, %s847_s13  ;;  %p853_p13 = scmp.lt.s32.totalorder %s847_s13, %s847_s13 }
  0x20   :  { %p854_p0 = por %p853_p13, %p852_p12 }
  0x22   :  { %p855_p1 = pnand %p854_p0, %p848_p11 }
  0x24   :  { %858 = shalt.err (!%p855_p1)
}
  0x25   :  { %65 = dma.hbm_to_vmem [thread:$0]  %s1319_s3, 1024, %s1113_s12, [#allocation9], %s1049_s21, %s1049_s21, %s1050_s22  }
  0x26   :  { %s1051_s14 = smov [#allocation11]   ;;  %s1052_s16 = smov [#allocation14]  }
  0x27   :  { %s81_s15 = sshll.u32 %s1051_s14, 4  ;;  %s103_s17 = sshll.u32 %s1052_s16, 4  ;;  %s82_s15 = int_to_ptr.vmem [resolvable:$true] %s81_s15  ;;  %s1150_s17 = int_to_ptr.vmem [resolvable:$true] %s103_s17 }
  0x28   :  { %s859_s20 = scalar_lea.hbm %s1321_s5, 1024 }
  0x29   :  { %p860_p2 = scmp.ne.s32.totalorder %s1321_s5, %s859_s20  ;;  %p863_p3 = scmp.lt.u32.totalorder %s859_s20, %s1321_s5 }
  0x2b   :  { %p865_p4 = pnand %p863_p3, %p860_p2 }
  0x2d   :  { %868 = shalt.err (!%p865_p4)
}
  0x2e   :  { %s869_s3 = scalar_lea.vmem %s82_s15, 1024  ;;  %p874_p6 = scmp.lt.s32.totalorder %s82_s15, %s82_s15 }
  0x2f   :  { %p870_p5 = scmp.ne.s32.totalorder %s82_s15, %s869_s3  ;;  %p875_p7 = scmp.lt.s32.totalorder %s869_s3, %s869_s3 }
  0x31   :  { %p876_p8 = por %p875_p7, %p874_p6 }
  0x33   :  { %p877_p9 = pnand %p876_p8, %p870_p5 }
  0x35   :  { %880 = shalt.err (!%p877_p9)
}
  0x36   :  { %87 = dma.hbm_to_vmem [thread:$0]  %s1321_s5, 1024, %s82_s15, [#allocation12], %s1049_s21, %s1049_s21, %s1050_s22  }
  0x37   :  { %s881_s30 = scalar_lea.hbm %s1323_s7, 1024 }
  0x38   :  { %p882_p10 = scmp.ne.s32.totalorder %s1323_s7, %s881_s30  ;;  %p885_p11 = scmp.lt.u32.totalorder %s881_s30, %s1323_s7 }
  0x3a   :  { %p887_p12 = pnand %p885_p11, %p882_p10 }
  0x3c   :  { %890 = shalt.err (!%p887_p12)
}
  0x3d   :  { %s891_s14 = scalar_lea.vmem %s1150_s17, 1024  ;;  %p896_p0 = scmp.lt.s32.totalorder %s1150_s17, %s1150_s17 }
  0x3e   :  { %p892_p13 = scmp.ne.s32.totalorder %s1150_s17, %s891_s14  ;;  %p897_p1 = scmp.lt.s32.totalorder %s891_s14, %s891_s14 }
  0x40   :  { %p898_p2 = por %p897_p1, %p896_p0 }
  0x42   :  { %p899_p3 = pnand %p898_p2, %p892_p13 }
  0x44   :  { %902 = shalt.err (!%p899_p3)
}
  0x45   :  { %109 = dma.hbm_to_vmem [thread:$0]  %s1323_s7, 1024, %s1150_s17, [#allocation15], %s1049_s21, %s1049_s21, %s1050_s22  }
  0x46   :  { %s1053_s16 = smov [#allocation2]   ;;  %s1054_s19 = smov [#allocation7]  }
  0x47   :  { %s25_s18 = sshll.u32 %s1053_s16, 4  ;;  %s50_s20 = sshll.u32 %s1054_s19, 4  ;;  %s26_s18 = int_to_ptr.vmem [resolvable:$true] %s25_s18  ;;  %s51_s20 = int_to_ptr.vmem [resolvable:$true] %s50_s20 }
  0x48   :  { %s903_s25 = scalar_lea.hbm %s1316_s0, 128 }
  0x49   :  { %p904_p4 = scmp.ne.s32.totalorder %s1316_s0, %s903_s25  ;;  %p907_p5 = scmp.lt.u32.totalorder %s903_s25, %s1316_s0 }
  0x4b   :  { %p909_p6 = pnand %p907_p5, %p904_p4 }
  0x4d   :  { %912 = shalt.err (!%p909_p6)
}
  0x4e   :  { %s913_s7 = scalar_lea.vmem %s26_s18, 128  ;;  %p918_p8 = scmp.lt.s32.totalorder %s26_s18, %s26_s18 }
  0x4f   :  { %p914_p7 = scmp.ne.s32.totalorder %s26_s18, %s913_s7  ;;  %p919_p9 = scmp.lt.s32.totalorder %s913_s7, %s913_s7 }
  0x51   :  { %p920_p10 = por %p919_p9, %p918_p8 }
  0x53   :  { %p921_p11 = pnand %p920_p10, %p914_p7 }
  0x55   :  { %924 = shalt.err (!%p921_p11)
}
  0x56   :  { %31 = dma.hbm_to_vmem [thread:$0]  %s1316_s0, 128, %s26_s18, [#allocation3], %s1049_s21, %s1049_s21, %s1050_s22  }
  0x57   :  { %s925_s11 = scalar_lea.hbm %s1318_s2, 16 }
  0x58   :  { %p926_p12 = scmp.ne.s32.totalorder %s1318_s2, %s925_s11  ;;  %p929_p13 = scmp.lt.u32.totalorder %s925_s11, %s1318_s2 }
  0x5a   :  { %p931_p0 = pnand %p929_p13, %p926_p12 }
  0x5c   :  { %934 = shalt.err (!%p931_p0)
}
  0x5d   :  { %s935_s5 = scalar_lea.vmem %s51_s20, 16  ;;  %s939_s15 = scalar_lea.vmem %s51_s20, 32 }
  0x5e   :  { %p936_p1 = scmp.ne.s32.totalorder %s51_s20, %s935_s5  ;;  %p940_p2 = scmp.lt.s32.totalorder %s51_s20, %s51_s20 }
  0x5f   :  { %p941_p3 = scmp.lt.s32.totalorder %s939_s15, %s935_s5 }
  0x61   :  { %p942_p4 = por %p941_p3, %p940_p2 }
  0x63   :  { %p943_p5 = pnand %p942_p4, %p936_p1 }
  0x65   :  { %946 = shalt.err (!%p943_p5)
}
  0x66   :  { %53 = dma.hbm_to_vmem [thread:$0]  %s1318_s2, 16, %s51_s20, [#allocation6]  }
  0x67   :  { %s1055_s22 = smov [#allocation10]   ;;  %s1056_s18 = smov [#allocation13]  }
  0x68   :  { %s72_s16 = sshll.u32 %s1055_s22, 4  ;;  %s94_s19 = sshll.u32 %s1056_s18, 4  ;;  %s73_s16 = int_to_ptr.vmem [resolvable:$true] %s72_s16  ;;  %s95_s19 = int_to_ptr.vmem [resolvable:$true] %s94_s19 }
  0x69   :  { %s947_s25 = scalar_lea.hbm %s1320_s4, 16 }
  0x6a   :  { %p948_p6 = scmp.ne.s32.totalorder %s1320_s4, %s947_s25  ;;  %p951_p7 = scmp.lt.u32.totalorder %s947_s25, %s1320_s4 }
  0x6c   :  { %p953_p8 = pnand %p951_p7, %p948_p6 }
  0x6e   :  { %956 = shalt.err (!%p953_p8)
}
  0x6f   :  { %s957_s2 = scalar_lea.vmem %s73_s16, 16  ;;  %s961_s20 = scalar_lea.vmem %s73_s16, 32 }
  0x70   :  { %p958_p9 = scmp.ne.s32.totalorder %s73_s16, %s957_s2  ;;  %p962_p10 = scmp.lt.s32.totalorder %s73_s16, %s73_s16 }
  0x71   :  { %p963_p11 = scmp.lt.s32.totalorder %s961_s20, %s957_s2 }
  0x73   :  { %p964_p12 = por %p963_p11, %p962_p10 }
  0x75   :  { %p965_p13 = pnand %p964_p12, %p958_p9 }
  0x77   :  { %968 = shalt.err (!%p965_p13)
}
  0x78   :  { %75 = dma.hbm_to_vmem [thread:$0]  %s1320_s4, 16, %s73_s16, [#allocation9]  }
  0x79   :  { %s969_s30 = scalar_lea.hbm %s1322_s6, 16 }
  0x7a   :  { %p970_p0 = scmp.ne.s32.totalorder %s1322_s6, %s969_s30  ;;  %p973_p1 = scmp.lt.u32.totalorder %s969_s30, %s1322_s6 }
  0x7c   :  { %p975_p2 = pnand %p973_p1, %p970_p0 }
  0x7e   :  { %978 = shalt.err (!%p975_p2)
}
  0x7f   :  { %s979_s14 = scalar_lea.vmem %s95_s19, 16  ;;  %s983_s5 = scalar_lea.vmem %s95_s19, 32 }
  0x80   :  { %p980_p3 = scmp.ne.s32.totalorder %s95_s19, %s979_s14  ;;  %p984_p4 = scmp.lt.s32.totalorder %s95_s19, %s95_s19 }
  0x81   :  { %p985_p5 = scmp.lt.s32.totalorder %s983_s5, %s979_s14 }
  0x83   :  { %p986_p6 = por %p985_p5, %p984_p4 }
  0x85   :  { %p987_p7 = pnand %p986_p6, %p980_p3 }
  0x87   :  { %990 = shalt.err (!%p987_p7)
}
  0x88   :  { %97 = dma.hbm_to_vmem [thread:$0]  %s1322_s6, 16, %s95_s19, [#allocation12]  }
  0x89   :  { %s1057_s0 = smov [#allocation16]   ;;  %s991_s18 = scalar_lea.hbm %s1324_s8, 16 }
  0x8a   :  { %s116_s21 = sshll.u32 %s1057_s0, 4  ;;  %p992_p8 = scmp.ne.s32.totalorder %s1324_s8, %s991_s18  ;;  %s117_s21 = int_to_ptr.vmem [resolvable:$true] %s116_s21 }
  0x8b   :  { %p995_p9 = scmp.lt.u32.totalorder %s991_s18, %s1324_s8 }
  0x8d   :  { %p997_p10 = pnand %p995_p9, %p992_p8 }
  0x8f   :  { %1000 = shalt.err (!%p997_p10)
}
  0x90   :  { %s1001_s3 = scalar_lea.vmem %s117_s21, 16  ;;  %s1005_s6 = scalar_lea.vmem %s117_s21, 32 }
  0x91   :  { %p1002_p11 = scmp.ne.s32.totalorder %s117_s21, %s1001_s3  ;;  %p1006_p12 = scmp.lt.s32.totalorder %s117_s21, %s117_s21 }
  0x92   :  { %p1007_p13 = scmp.lt.s32.totalorder %s1005_s6, %s1001_s3 }
  0x94   :  { %p1008_p0 = por %p1007_p13, %p1006_p12 }
  0x96   :  { %p1009_p1 = pnand %p1008_p0, %p1002_p11 }
  0x98   :  { %1012 = shalt.err (!%p1009_p1)
}
  0x99   :  { %119 = dma.hbm_to_vmem [thread:$0]  %s1324_s8, 16, %s117_s21, [#allocation15]  }
  0x9a   :  { %1035 = dma.done.wait [#allocation3], 128  }
  0x9b   :  { %1036 = vsyncadd [#allocation3], 4294967168 }
  0x9c   :  { %1037 = dma.done.wait [#allocation6], 144  }
  0x9d   :  { %1038 = vsyncadd [#allocation6], 4294967152 }
  0x9e   :  { %1039 = dma.done.wait [#allocation9], 1040  }
  0x9f   :  { %1040 = vsyncadd [#allocation9], 4294966256 }
  0xa0   :  { %1041 = dma.done.wait [#allocation12], 1040  }
  0xa1   :  { %1042 = vsyncadd [#allocation12], 4294966256 }
  0xa2   :  { %1043 = dma.done.wait [#allocation15], 1040  }
  0xa3   :  { %1044 = vsyncadd [#allocation15], 4294966256  ;;  %v1058_v0 = vmov 0.0   ;;  %vm1059_vm0 = vmmov 0   ;;  %v789_v1 = vld [vmem:[#allocation5] sm:$0xff]   ;;  %v790_v2 = vld [vmem:[#allocation2] sm:$0xff]   ;;  %v247_v15 = vlaneseq }
  0xa4   :  { %707 = vmatprep.subr.bf16.mxu0 %v1058_v0  ;;  %709 = vmatprep.mubr.msk.bf16.mxu0 %vm1059_vm0, %v1058_v0  ;;  %vm176_vm1 = vcmask 130048   ;;  %v791_v3 = vld [vmem:[#allocation8] sm:$0xff]   ;;  %v792_v4 = vld [vmem:[#allocation8 + $0x8] sm:$0xff]   ;;  %v793_v5 = vld [vmem:[#allocation8 + $0x10] sm:$0xff]   ;;  %vm1060_vm2 = vmmov 1   ;;  %v1061_v22 = vmov 0  }
  0xa5   :  { %713 = vmatprep.subr.bf16.mxu1 %v1058_v0  ;;  %729 = vmatprep.mubr.msk.bf16.mxu1 %vm1059_vm0, %v1058_v0  ;;  %v794_v6 = vld [vmem:[#allocation8 + $0x18] sm:$0xff]   ;;  %v795_v7 = vld [vmem:[#allocation8 + $0x20] sm:$0xff]   ;;  %v796_v8 = vld [vmem:[#allocation8 + $0x28] sm:$0xff]   ;;  %v1269_v20 = vshrl.u32 %v247_v15, 7  ;;  %vm424_vm6 = vcmask 1041409   ;;  %s1062_s8 = smov [#allocation17]  }
  0xa6   :  { %708 = vmatpush3.bf16.msra.mxu0 %v789_v1  ;;  %714 = vmatpush3.bf16.msra.mxu1 %v791_v3  ;;  %v797_v9 = vld [vmem:[#allocation8 + $0x30] sm:$0xff]   ;;  %v798_v10 = vld [vmem:[#allocation8 + $0x38] sm:$0xff]   ;;  %vm234_vm3 = vmpackc.low %vm1060_vm2, %vm1060_vm2  ;;  %s635_s27 = sshll.u32 %s1062_s8, 4  ;;  %s636_s27 = int_to_ptr.vmem [resolvable:$true] %s635_s27 }
  0xa7   :  { %733 = vmatprep.subr.bf16.mxu0 %v1058_v0  ;;  %715 = vmatprep.subr.bf16.mxu1 %v1058_v0  ;;  %vm235_vm4 = vmpackc.low %vm1059_vm0, %vm1059_vm0  ;;  %v236_v23 = vsel %vm234_vm3, 65537, %v1061_v22  ;;  %v243_v25 = vld [vmem:[#allocation7] sm:$0x1]  ;;  %v249_v29 = vsub.s32 0, %v1269_v20  ;;  %v799_v38 = vld [vmem:[#allocation11] sm:$0xff]   ;;  %s1013_s2 = scalar_lea.vmem %s636_s27, 32  ;;  %p1018_p3 = scmp.lt.s32.totalorder %s636_s27, %s636_s27 }
  0xa8   :  { %v237_v24 = vsel %vm235_vm4, 65537, %v1061_v22  ;;  %v245_v28 = vpack.i.b16 %v243_v25, %v243_v25  ;;  %v800_v39 = vld [vmem:[#allocation11 + $0x8] sm:$0xff]   ;;  %v801_v40 = vld [vmem:[#allocation11 + $0x10] sm:$0xff]   ;;  %v802_v41 = vld [vmem:[#allocation11 + $0x18] sm:$0xff]   ;;  %p1014_p2 = scmp.ne.s32.totalorder %s636_s27, %s1013_s2  ;;  %p1019_p4 = scmp.lt.s32.totalorder %s1013_s2, %s1013_s2 }
  0xa9   :  { %710 = vmatmul.mubr.msk.bf16.vlgmr.msra.gmra.mrb[0].mxu0 %vm176_vm1, %v790_v2  ;;  %v651_v27 = vcombine.low %v236_v23, %v237_v24  ;;  %v803_v42 = vld [vmem:[#allocation11 + $0x20] sm:$0xff]   ;;  %v804_v43 = vld [vmem:[#allocation11 + $0x28] sm:$0xff]   ;;  %v805_v44 = vld [vmem:[#allocation11 + $0x30] sm:$0xff]  }
  0xaa   :  { %749 = vmatprep.mubr.msk.bf16.mxu0 %vm1059_vm0, %v1058_v0  ;;  %716 = vmatpush3.bf16.msra.mxu1 %v792_v4  ;;  %v250_v33 = vrot.slane %v245_v28, %v249_v29  ;;  %v806_v45 = vld [vmem:[#allocation11 + $0x38] sm:$0xff]   ;;  %v807_v46 = vld [vmem:[#allocation14] sm:$0xff]   ;;  %v808_v47 = vld [vmem:[#allocation14 + $0x8] sm:$0xff]   ;;  %p1020_p5 = por %p1019_p4, %p1018_p3 }
  0xab   :  { %717 = vmatprep.subr.bf16.mxu1 %v1058_v0  ;;  %vm1274_vm5 = vcmp.ne.s16.totalorder %v651_v27, 0  ;;  %734 = vmatpush3.bf16.msra.mxu0 %v799_v38  ;;  %v809_v48 = vld [vmem:[#allocation14 + $0x10] sm:$0xff]   ;;  %v810_v49 = vld [vmem:[#allocation14 + $0x18] sm:$0xff]   ;;  %v811_v50 = vld [vmem:[#allocation14 + $0x20] sm:$0xff]  }
  0xac   :  { %735 = vmatprep.subr.bf16.mxu0 %v1058_v0  ;;  %v812_v51 = vld [vmem:[#allocation14 + $0x28] sm:$0xff]   ;;  %v813_v52 = vld [vmem:[#allocation14 + $0x30] sm:$0xff]   ;;  %v368_v62 = vld [vmem:[#allocation10] sm:$0x1]  ;;  %p1021_p6 = pnand %p1020_p5, %p1014_p2 }
  0xad   :  { %v370_v1 = vpack.i.b16 %v368_v62, %v368_v62  ;;  %v669_v38 = vld [vmem:[#allocation16] ss:$0 sm:$0xff] }
  0xae   :  { %718 = vmatpush3.bf16.msra.mxu1 %v793_v5 }
  0xaf   :  { %719 = vmatprep.subr.bf16.mxu1 %v1058_v0  ;;  %736 = vmatpush3.bf16.msra.mxu0 %v800_v39  ;;  %v375_v4 = vrot.slane %v370_v1, %v249_v29 }
  0xb0   :  { %737 = vmatprep.subr.bf16.mxu0 %v1058_v0 }
  0xb2   :  { %720 = vmatpush3.bf16.msra.mxu1 %v794_v6 }
  0xb3   :  { %721 = vmatprep.subr.bf16.mxu1 %v1058_v0  ;;  %738 = vmatpush3.bf16.msra.mxu0 %v801_v40 }
  0xb4   :  { %739 = vmatprep.subr.bf16.mxu0 %v1058_v0 }
  0xb6   :  { %722 = vmatpush3.bf16.msra.mxu1 %v795_v7 }
  0xb7   :  { %723 = vmatprep.subr.bf16.mxu1 %v1058_v0  ;;  %740 = vmatpush3.bf16.msra.mxu0 %v802_v41 }
  0xb8   :  { %741 = vmatprep.subr.bf16.mxu0 %v1058_v0 }
  0xba   :  { %724 = vmatpush3.bf16.msra.mxu1 %v796_v8 }
  0xbb   :  { %725 = vmatprep.subr.bf16.mxu1 %v1058_v0  ;;  %742 = vmatpush3.bf16.msra.mxu0 %v803_v42 }
  0xbc   :  { %743 = vmatprep.subr.bf16.mxu0 %v1058_v0 }
  0xbe   :  { %726 = vmatpush3.bf16.msra.mxu1 %v797_v9 }
  0xbf   :  { %727 = vmatprep.subr.bf16.mxu1 %v1058_v0  ;;  %744 = vmatpush3.bf16.msra.mxu0 %v804_v43 }
  0xc0   :  { %745 = vmatprep.subr.bf16.mxu0 %v1058_v0 }
  0xc2   :  { %728 = vmatpush3.bf16.msra.mxu1 %v798_v10 }
  0xc3   :  { %753 = vmatprep.subr.bf16.mxu1 %v1058_v0  ;;  %746 = vmatpush3.bf16.msra.mxu0 %v805_v44 }
  0xc4   :  { %747 = vmatprep.subr.bf16.mxu0 %v1058_v0 }
  0xc7   :  { %748 = vmatpush3.bf16.msra.mxu0 %v806_v45 }
 0x17c   :  { %v214_v11 = vpop.f32.mrb[0].mxu0 }
 0x17d   :  { %v221_v12 = vrot.slane %v214_v11, 4  ;;  %v711_v13 = vpop.f32.mrb[1].mxu0 }
 0x17e   :  { %v217_v14 = vpop.f32.mrb[2].mxu0 }
 0x17f   :  { %v222_v16 = vadd.f32 %v221_v12, %v214_v11  ;;  %v229_v17 = vpack.c.bf16 %v217_v14, %v214_v11  ;;  %v712_v18 = vpop.f32.mrb[3].mxu0 }
 0x181   :  { %v223_v19 = vrot.slane %v222_v16, 2 }
 0x183   :  { %v224_v21 = vadd.f32 %v223_v19, %v222_v16 }
 0x185   :  { %v225_v26 = vrot.slane %v224_v21, 1 }
 0x187   :  { %v226_v30 = vadd.f32 %v225_v26, %v224_v21 }
 0x189   :  { %v227_v31 = vmul.f32 0.125, %v226_v30  ;;  %v814_v30 = vld [vmem:[#allocation14 + $0x38] sm:$0xff]  }
 0x18b   :  { %v228_v34 = vpack.c.bf16 %v227_v31, %v227_v31  ;;  %v660_v31 = vld [vmem:[#allocation13] ss:$0 sm:$0xff] }
 0x18d   :  { %v242_v35 = vsel %vm1274_vm5, %v228_v34, %v229_v17 }
 0x18e   :  { %v251_v36 = vadd.bf16 %v250_v33, %v242_v35 }
 0x190   :  { %v252_v37 = vmax.bf16 %v1061_v22, %v251_v36 }
 0x192   :  { %730 = vmatmul.mubr.bf16.vlgmr.msra.gmra.mrb[0].mxu1 %v252_v37 }
 0x193   :  { %769 = vmatprep.mubr.msk.bf16.mxu1 %vm1059_vm0, %v1058_v0  ;;  %754 = vmatpush3.bf16.msra.mxu1 %v807_v46 }
 0x194   :  { %755 = vmatprep.subr.bf16.mxu1 %v1058_v0 }
 0x197   :  { %756 = vmatpush3.bf16.msra.mxu1 %v808_v47 }
 0x198   :  { %757 = vmatprep.subr.bf16.mxu1 %v1058_v0 }
 0x19b   :  { %758 = vmatpush3.bf16.msra.mxu1 %v809_v48 }
 0x19c   :  { %759 = vmatprep.subr.bf16.mxu1 %v1058_v0 }
 0x19f   :  { %760 = vmatpush3.bf16.msra.mxu1 %v810_v49 }
 0x1a0   :  { %761 = vmatprep.subr.bf16.mxu1 %v1058_v0 }
 0x1a3   :  { %762 = vmatpush3.bf16.msra.mxu1 %v811_v50 }
 0x1a4   :  { %763 = vmatprep.subr.bf16.mxu1 %v1058_v0 }
 0x1a7   :  { %764 = vmatpush3.bf16.msra.mxu1 %v812_v51 }
 0x1a8   :  { %765 = vmatprep.subr.bf16.mxu1 %v1058_v0 }
 0x1ab   :  { %766 = vmatpush3.bf16.msra.mxu1 %v813_v52 }
 0x1ac   :  { %767 = vmatprep.subr.bf16.mxu1 %v1058_v0 }
 0x1af   :  { %768 = vmatpush3.bf16.msra.mxu1 %v814_v30 }
 0x265   :  { %v351_v53 = vpop.f32.mrb[0].mxu1 }
 0x266   :  { %v358_v54 = vrot.slane %v351_v53, 4  ;;  %v731_v55 = vpop.f32.mrb[1].mxu1 }
 0x267   :  { %v354_v56 = vpop.f32.mrb[2].mxu1 }
 0x268   :  { %v359_v57 = vadd.f32 %v358_v54, %v351_v53  ;;  %v366_v58 = vpack.c.bf16 %v354_v56, %v351_v53  ;;  %v732_v59 = vpop.f32.mrb[3].mxu1 }
 0x26a   :  { %v360_v60 = vrot.slane %v359_v57, 2 }
 0x26c   :  { %v361_v61 = vadd.f32 %v360_v60, %v359_v57 }
 0x26e   :  { %v362_v63 = vrot.slane %v361_v61, 1 }
 0x270   :  { %v363_v2 = vadd.f32 %v362_v63, %v361_v61 }
 0x272   :  { %v364_v3 = vmul.f32 0.125, %v363_v2 }
 0x274   :  { %v365_v5 = vpack.c.bf16 %v364_v3, %v364_v3 }
 0x276   :  { %v367_v0 = vsel %vm1274_vm5, %v365_v5, %v366_v58 }
 0x277   :  { %v376_v6 = vadd.bf16 %v375_v4, %v367_v0 }
 0x279   :  { %v377_v7 = vmax.bf16 %v1061_v22, %v376_v6 }
 0x27b   :  { %v378_v8 = vunpack.c.l.bf16 %v377_v7  ;;  %v379_v9 = vunpack.c.h.bf16 %v377_v7 }
 0x27d   :  { %v380_v10 = vrot.slane %v378_v8, 4  ;;  %v386_v11 = vrot.slane %v379_v9, 4 }
 0x27f   :  { %v381_v12 = vadd.f32 %v380_v10, %v378_v8  ;;  %v387_v13 = vadd.f32 %v386_v11, %v379_v9 }
 0x281   :  { %v382_v14 = vrot.slane %v381_v12, 2  ;;  %v388_v15 = vrot.slane %v387_v13, 2 }
 0x283   :  { %v383_v16 = vadd.f32 %v382_v14, %v381_v12  ;;  %v389_v17 = vadd.f32 %v388_v15, %v387_v13 }
 0x285   :  { %v384_v18 = vrot.slane %v383_v16, 1  ;;  %v390_v19 = vrot.slane %v389_v17, 1 }
 0x287   :  { %v385_v20 = vadd.f32 %v384_v18, %v383_v16  ;;  %v391_v21 = vadd.f32 %v390_v19, %v389_v17 }
 0x289   :  { %v393_v23 = vmul.f32 0.125, %v385_v20  ;;  %v394_v24 = vmul.f32 0.125, %v391_v21 }
 0x28b   :  { %v395_v25 = vpack.c.bf16 %v393_v23, %v393_v23  ;;  %v396_v26 = vpack.c.bf16 %v394_v24, %v394_v24 }
 0x28d   :  { %v422_v22 = vunpack.c.l.b16 %v395_v25  ;;  %v423_v27 = vunpack.c.l.b16 %v396_v26 }
 0x28f   :  { %v425_v28 = vsel %vm424_vm6, %v423_v27, %v422_v22 }
 0x290   :  { %v426_v29 = vpack.c.b16 %v425_v28, %v425_v28 }
 0x292   :  { %750 = vmatmul.mubr.bf16.vlgmr.msra.gmra.mrb[4].mxu0 %v426_v29 }
 0x365   :  { %v510_v32 = vpop.f32.mrb[4].mxu0 }
 0x366   :  { %v511_v33 = vadd.f32 %v660_v31, %v510_v32  ;;  %v751_v34 = vpop.f32.mrb[5].mxu0 }
 0x367   :  { %v513_v35 = vpop.f32.mrb[6].mxu0 }
 0x368   :  { %v516_v36 = vpack.c.bf16 %v511_v33, %v511_v33  ;;  %v752_v37 = vpop.f32.mrb[7].mxu0 }
 0x36a   :  { %770 = vmatmul.mubr.bf16.vlgmr.msra.gmra.mrb[4].mxu1 %v516_v36 }
 0x43d   :  { %v622_v39 = vpop.f32.mrb[4].mxu1 }
 0x43e   :  { %v623_v40 = vadd.f32 %v669_v38, %v622_v39  ;;  %v771_v41 = vpop.f32.mrb[5].mxu1 }
 0x43f   :  { %v625_v42 = vpop.f32.mrb[6].mxu1 }
 0x440   :  { %628 = vst [vmem:[#allocation17] sm:$0x3] %v623_v40  ;;  %v772_v43 = vpop.f32.mrb[7].mxu1 }
 0x441   :  { %1024 = shalt.err (!%p1021_p6)
}
 0x442   :  { %s1025_s17 = scalar_lea.hbm %s1325_s9, 32 }
 0x443   :  { %p1026_p7 = scmp.ne.s32.totalorder %s1325_s9, %s1025_s17  ;;  %p1029_p8 = scmp.lt.u32.totalorder %s1025_s17, %s1325_s9 }
 0x445   :  { %p1031_p9 = pnand %p1029_p8, %p1026_p7 }
 0x447   :  { %1034 = shalt.err (!%p1031_p9)
}
 0x448   :  { %638 = dma.vmem_to_hbm [thread:$0]  %s636_s27, 32, %s1325_s9, [#allocation4]  }
 0x449   :  { %1045 = dma.done.wait [#allocation4], 32  }
 0x44a   :  { %1046 = vsyncadd [#allocation4], 4294967264 }
 0x44b   :  { %642 = vsyncpa [#allocation3], 1 }
 0x44c   :  { %643 = vsyncpa [#allocation6], 1 }
 0x44d   :  { %644 = vsyncpa [#allocation9], 1 }
 0x44e   :  { %645 = vsyncpa [#allocation12], 1 }
 0x44f   :  { %646 = vsyncpa [#allocation15], 1 }
 0x450   :  { %647 = vsyncpa [#allocation4], 1 }

</bundles_post_ra>
